<compile_context>
chip_gen: v6e
topology: v6e:2x2x1
jax: 0.10.0
libtpu: 0.0.40
codegen_flags: <defaults>
</compile_context>

<pallas_src>
import functools

import jax
import jax.numpy as jnp
from jax.experimental import pallas as pl
from jax.experimental.pallas import tpu as pltpu


def _round_up(n, m):
    return ((n + m - 1) // m) * m


def _critic_kernel(obs_ref, act_ref, w1o_ref, w1a_ref, b1_ref,
                   w2_ref, b2_ref, wq_ref, bq_ref, o_ref,
                   *, use_sigmoid: bool):
    """relu(obs@W1o + act@W1a + b1) -> relu(.@W2 + b2) -> wq . h2^T + bq [-> sigmoid]."""
    obs = obs_ref[...]                                          # [TB, obs_dim]
    act = act_ref[...]                                          # [TB, act_dim]

    # Fused "concat" layer: obs@W1_obs + act@W1_act + b1
    h1 = jnp.dot(obs, w1o_ref[...], preferred_element_type=jnp.float32)
    h1 = h1 + jnp.dot(act, w1a_ref[...], preferred_element_type=jnp.float32)
    h1 = jnp.maximum(h1 + b1_ref[...], 0.0)                     # relu, [TB, H]

    h2 = jnp.dot(h1, w2_ref[...], preferred_element_type=jnp.float32) + b2_ref[...]
    h2 = jnp.maximum(h2, 0.0)                                   # relu, [TB, H]

    # Final layer as wq[1,H] contracted with h2[TB,H] over H -> [1, TB]
    # (lane-dense output slab: batch lives on the 128-lane axis).
    q = jax.lax.dot_general(
        wq_ref[...], h2,
        dimension_numbers=(((1,), (1,)), ((), ())),
        preferred_element_type=jnp.float32)                     # [1, TB]
    q = q + bq_ref[...]                                         # bq is [1, 1]
    if use_sigmoid:                                             # loss_type == 'c'
        q = jax.nn.sigmoid(q)
    o_ref[...] = q.astype(o_ref.dtype)


def critic_forward(obs, action, params, loss_type='q'):
    """obs: [B, obs_dim], action: [B, action_dim] -> q: [B, 1]."""
    w1o, w1a, b1, w2, b2, wq_row, bq = params
    B, obs_dim = obs.shape
    act_dim = action.shape[1]

    # Batch tiling: keep tiles <= 512 rows (comfortably under v7x's 64 MiB VMEM).
    MAX_TILE_B = 512
    if B <= MAX_TILE_B:
        tile_b = _round_up(B, 8)
    else:
        tile_b = MAX_TILE_B
    b_pad = _round_up(B, tile_b)
    if b_pad != B:
        pad = b_pad - B
        obs = jnp.pad(obs, ((0, pad), (0, 0)))
        action = jnp.pad(action, ((0, pad), (0, 0)))

    kernel = functools.partial(_critic_kernel, use_sigmoid=(loss_type == 'c'))
    const_map = lambda i: (0, 0)   # weights/biases stay VMEM-resident across tiles

    out = pl.pallas_call(
        kernel,
        out_shape=jax.ShapeDtypeStruct((1, b_pad), jnp.float32),
        grid=(b_pad // tile_b,),
        in_specs=[
            pl.BlockSpec((tile_b, obs_dim), lambda i: (i, 0)),
            pl.BlockSpec((tile_b, act_dim), lambda i: (i, 0)),
            pl.BlockSpec(w1o.shape, const_map),
            pl.BlockSpec(w1a.shape, const_map),
            pl.BlockSpec(b1.shape, const_map),
            pl.BlockSpec(w2.shape, const_map),
            pl.BlockSpec(b2.shape, const_map),
            pl.BlockSpec(wq_row.shape, const_map),
            pl.BlockSpec(bq.shape, const_map),
        ],
        out_specs=pl.BlockSpec((1, tile_b), lambda i: (0, i)),
        compiler_params=pltpu.CompilerParams(
            dimension_semantics=("parallel",),
            vmem_limit_bytes=48 << 20),
    )(obs, action, w1o, w1a, b1, w2, b2, wq_row, bq)

    # Layout plumbing only: lane-dense [1, B_pad] slab -> [B, 1] column.
    return out[0, :B].reshape(B, 1)


def init_critic_params(key, obs_dim, action_dim, hidden_size):
    """Xavier(glorot)-normal weights, zero biases (matches glorot_init).

    fc1's weight is drawn as the full [obs_dim+action_dim, H] matrix (so the
    distribution matches the PyTorch combined layer) and then split into the
    obs / action row blocks used by the fused kernel.
    """
    def xavier_normal(k, fan_in, fan_out):
        std = (2.0 / (fan_in + fan_out)) ** 0.5
        return std * jax.random.normal(k, (fan_in, fan_out), dtype=jnp.float32)

    k1, k2, k3 = jax.random.split(key, 3)
    in_dim = obs_dim + action_dim
    w1 = xavier_normal(k1, in_dim, hidden_size)
    w1o = w1[:obs_dim]                                   # [obs_dim, H]
    w1a = w1[obs_dim:]                                   # [action_dim, H]
    b1 = jnp.zeros((1, hidden_size), dtype=jnp.float32)
    w2 = xavier_normal(k2, hidden_size, hidden_size)
    b2 = jnp.zeros((1, hidden_size), dtype=jnp.float32)
    wq_row = xavier_normal(k3, hidden_size, 1).T         # stored as [1, H] row
    bq = jnp.zeros((1, 1), dtype=jnp.float32)
    # TODO(synk): optionally pad H / in_dim to 128 at init for full MXU lanes.
    return (w1o, w1a, b1, w2, b2, wq_row, bq)


def critic_reference(obs, action, params, loss_type='q'):
    """Pure-JAX reference for correctness checking."""
    w1o, w1a, b1, w2, b2, wq_row, bq = params
    h1 = jax.nn.relu(obs @ w1o + action @ w1a + b1)
    h2 = jax.nn.relu(h1 @ w2 + b2)
    q = h2 @ wq_row.T + bq
    if loss_type == 'c':
        q = jax.nn.sigmoid(q)
    return q


if __name__ == "__main__":
    key = jax.random.PRNGKey(0)
    k_obs, k_act, k_params = jax.random.split(key, 3)

    batch = 8
    obs_dim = 16
    action_dim = 8
    hidden_size = 32

    obs = jax.random.normal(k_obs, (batch, obs_dim), dtype=jnp.float32)
    action = jax.random.normal(k_act, (batch, action_dim), dtype=jnp.float32)
    params = init_critic_params(k_params, obs_dim, action_dim, hidden_size)

    # loss_type='q' (default): raw q values.
    q = critic_forward(obs, action, params, loss_type='q')
    jax.block_until_ready(q)
    q_ref = critic_reference(obs, action, params, loss_type='q')
    assert q.shape == (batch, 1)
    assert jnp.allclose(q, q_ref, atol=1e-5, rtol=1e-5)

    # loss_type='c': sigmoid classifier head.
    qc = critic_forward(obs, action, params, loss_type='c')
    jax.block_until_ready(qc)
    qc_ref = critic_reference(obs, action, params, loss_type='c')
    assert jnp.allclose(qc, qc_ref, atol=1e-5, rtol=1e-5)

    # Ragged batch exercises the zero-pad + output-slice path.
    q5 = critic_forward(obs[:5], action[:5], params, loss_type='q')
    jax.block_until_ready(q5)
    assert q5.shape == (5, 1)
    assert jnp.allclose(q5, q_ref[:5], atol=1e-5, rtol=1e-5)

    print("KERNEL_OK")
</pallas_src>

<mosaic_0001>
module attributes {stable_mosaic.version = 11 : i64} {
  func.func @_critic_kernel(%arg0: i32, %arg1: memref<8x16xf32, #tpu.memory_space<vmem>>, %arg2: memref<8x8xf32, #tpu.memory_space<vmem>>, %arg3: memref<16x32xf32, #tpu.memory_space<vmem>>, %arg4: memref<8x32xf32, #tpu.memory_space<vmem>>, %arg5: memref<1x32xf32, #tpu.memory_space<vmem>>, %arg6: memref<32x32xf32, #tpu.memory_space<vmem>>, %arg7: memref<1x32xf32, #tpu.memory_space<vmem>>, %arg8: memref<1x32xf32, #tpu.memory_space<vmem>>, %arg9: memref<1x1xf32, #tpu.memory_space<vmem>>, %arg10: memref<1x8xf32, #tpu.memory_space<vmem>>) attributes {dimension_semantics = [#tpu.dimension_semantics<parallel>], iteration_bounds = array<i64: 1>, scalar_prefetch = 0 : i64, scratch_operands = 0 : i64, tpu.core_type = #tpu.core_type<tc>, window_params = [{transform_indices = @transform_0, window_bounds = array<i64: 8, 16>}, {transform_indices = @transform_1, window_bounds = array<i64: 8, 8>}, {pipeline_mode = #tpu.pipeline_mode<synchronous>, transform_indices = @transform_2, window_bounds = array<i64: 16, 32>}, {pipeline_mode = #tpu.pipeline_mode<synchronous>, transform_indices = @transform_3, window_bounds = array<i64: 8, 32>}, {pipeline_mode = #tpu.pipeline_mode<synchronous>, transform_indices = @transform_4, window_bounds = array<i64: 1, 32>}, {pipeline_mode = #tpu.pipeline_mode<synchronous>, transform_indices = @transform_5, window_bounds = array<i64: 32, 32>}, {pipeline_mode = #tpu.pipeline_mode<synchronous>, transform_indices = @transform_6, window_bounds = array<i64: 1, 32>}, {pipeline_mode = #tpu.pipeline_mode<synchronous>, transform_indices = @transform_7, window_bounds = array<i64: 1, 32>}, {pipeline_mode = #tpu.pipeline_mode<synchronous>, transform_indices = @transform_8, window_bounds = array<i64: 1, 1>}, {transform_indices = @transform_9, window_bounds = array<i64: 1, 8>}]} {
    %c0 = arith.constant 0 : index
    %c0_0 = arith.constant 0 : index
    %0 = vector.load %arg1[%c0, %c0_0] : memref<8x16xf32, #tpu.memory_space<vmem>>, vector<8x16xf32>
    %c0_1 = arith.constant 0 : index
    %c0_2 = arith.constant 0 : index
    %1 = vector.load %arg2[%c0_1, %c0_2] : memref<8x8xf32, #tpu.memory_space<vmem>>, vector<8x8xf32>
    %c0_3 = arith.constant 0 : index
    %c0_4 = arith.constant 0 : index
    %2 = vector.load %arg3[%c0_3, %c0_4] : memref<16x32xf32, #tpu.memory_space<vmem>>, vector<16x32xf32>
    %cst = arith.constant dense<0.000000e+00> : vector<8x32xf32>
    %3 = tpu.matmul %0, %2, %cst {dimension_numbers = #tpu.dot_dimension_numbers<[1], [0], [0], [1], [0, 0, 1, 1], [], []>} : vector<8x16xf32>, vector<16x32xf32>, vector<8x32xf32> -> vector<8x32xf32>
    %c0_5 = arith.constant 0 : index
    %c0_6 = arith.constant 0 : index
    %4 = vector.load %arg4[%c0_5, %c0_6] : memref<8x32xf32, #tpu.memory_space<vmem>>, vector<8x32xf32>
    %cst_7 = arith.constant dense<0.000000e+00> : vector<8x32xf32>
    %5 = tpu.matmul %1, %4, %cst_7 {dimension_numbers = #tpu.dot_dimension_numbers<[1], [0], [0], [1], [0, 0, 1, 1], [], []>} : vector<8x8xf32>, vector<8x32xf32>, vector<8x32xf32> -> vector<8x32xf32>
    %6 = arith.addf %3, %5 : vector<8x32xf32>
    %c0_8 = arith.constant 0 : index
    %c0_9 = arith.constant 0 : index
    %7 = vector.load %arg5[%c0_8, %c0_9] : memref<1x32xf32, #tpu.memory_space<vmem>>, vector<1x32xf32>
    %8 = vector.broadcast %7 : vector<1x32xf32> to vector<8x32xf32>
    %9 = arith.addf %6, %8 : vector<8x32xf32>
    %cst_10 = arith.constant 0.000000e+00 : f32
    %10 = vector.broadcast %cst_10 : f32 to vector<8x32xf32>
    %11 = arith.maximumf %9, %10 : vector<8x32xf32>
    %c0_11 = arith.constant 0 : index
    %c0_12 = arith.constant 0 : index
    %12 = vector.load %arg6[%c0_11, %c0_12] : memref<32x32xf32, #tpu.memory_space<vmem>>, vector<32x32xf32>
    %cst_13 = arith.constant dense<0.000000e+00> : vector<8x32xf32>
    %13 = tpu.matmul %11, %12, %cst_13 {dimension_numbers = #tpu.dot_dimension_numbers<[1], [0], [0], [1], [0, 0, 1, 1], [], []>} : vector<8x32xf32>, vector<32x32xf32>, vector<8x32xf32> -> vector<8x32xf32>
    %c0_14 = arith.constant 0 : index
    %c0_15 = arith.constant 0 : index
    %14 = vector.load %arg7[%c0_14, %c0_15] : memref<1x32xf32, #tpu.memory_space<vmem>>, vector<1x32xf32>
    %15 = vector.broadcast %14 : vector<1x32xf32> to vector<8x32xf32>
    %16 = arith.addf %13, %15 : vector<8x32xf32>
    %cst_16 = arith.constant 0.000000e+00 : f32
    %17 = vector.broadcast %cst_16 : f32 to vector<8x32xf32>
    %18 = arith.maximumf %16, %17 : vector<8x32xf32>
    %c0_17 = arith.constant 0 : index
    %c0_18 = arith.constant 0 : index
    %19 = vector.load %arg8[%c0_17, %c0_18] : memref<1x32xf32, #tpu.memory_space<vmem>>, vector<1x32xf32>
    %cst_19 = arith.constant dense<0.000000e+00> : vector<1x8xf32>
    %20 = tpu.matmul %19, %18, %cst_19 {dimension_numbers = #tpu.dot_dimension_numbers<[1], [1], [0], [0], [0, 0, 1, 0], [], []>} : vector<1x32xf32>, vector<8x32xf32>, vector<1x8xf32> -> vector<1x8xf32>
    %c0_20 = arith.constant 0 : index
    %c0_21 = arith.constant 0 : index
    %21 = vector.load %arg9[%c0_20, %c0_21] : memref<1x1xf32, #tpu.memory_space<vmem>>, vector<1x1xf32>
    %22 = vector.broadcast %21 : vector<1x1xf32> to vector<1x8xf32>
    %23 = arith.addf %20, %22 : vector<1x8xf32>
    %c0_22 = arith.constant 0 : index
    %c0_23 = arith.constant 0 : index
    %24 = vector.load %arg10[%c0_22, %c0_23] : memref<1x8xf32, #tpu.memory_space<vmem>>, vector<1x8xf32>
    tpu.vector_store %arg10[%c0_22, %c0_23], %23 {strides = array<i32>} : memref<1x8xf32, #tpu.memory_space<vmem>>, vector<1x8xf32>,
    return
  }
  func.func @transform_0(%arg0: i32) -> (i32, i32) {
    %c0_i32 = arith.constant 0 : i32
    %c0_i32_0 = arith.constant 0 : i32
    return %arg0, %c0_i32 : i32, i32
  }
  func.func @transform_1(%arg0: i32) -> (i32, i32) {
    %c0_i32 = arith.constant 0 : i32
    %c0_i32_0 = arith.constant 0 : i32
    return %arg0, %c0_i32 : i32, i32
  }
  func.func @transform_2(%arg0: i32) -> (i32, i32) {
    %c0_i32 = arith.constant 0 : i32
    %c0_i32_0 = arith.constant 0 : i32
    %c0_i32_1 = arith.constant 0 : i32
    return %c0_i32, %c0_i32_0 : i32, i32
  }
  func.func @transform_3(%arg0: i32) -> (i32, i32) {
    %c0_i32 = arith.constant 0 : i32
    %c0_i32_0 = arith.constant 0 : i32
    %c0_i32_1 = arith.constant 0 : i32
    return %c0_i32, %c0_i32_0 : i32, i32
  }
  func.func @transform_4(%arg0: i32) -> (i32, i32) {
    %c0_i32 = arith.constant 0 : i32
    %c0_i32_0 = arith.constant 0 : i32
    %c0_i32_1 = arith.constant 0 : i32
    return %c0_i32, %c0_i32_0 : i32, i32
  }
  func.func @transform_5(%arg0: i32) -> (i32, i32) {
    %c0_i32 = arith.constant 0 : i32
    %c0_i32_0 = arith.constant 0 : i32
    %c0_i32_1 = arith.constant 0 : i32
    return %c0_i32, %c0_i32_0 : i32, i32
  }
  func.func @transform_6(%arg0: i32) -> (i32, i32) {
    %c0_i32 = arith.constant 0 : i32
    %c0_i32_0 = arith.constant 0 : i32
    %c0_i32_1 = arith.constant 0 : i32
    return %c0_i32, %c0_i32_0 : i32, i32
  }
  func.func @transform_7(%arg0: i32) -> (i32, i32) {
    %c0_i32 = arith.constant 0 : i32
    %c0_i32_0 = arith.constant 0 : i32
    %c0_i32_1 = arith.constant 0 : i32
    return %c0_i32, %c0_i32_0 : i32, i32
  }
  func.func @transform_8(%arg0: i32) -> (i32, i32) {
    %c0_i32 = arith.constant 0 : i32
    %c0_i32_0 = arith.constant 0 : i32
    %c0_i32_1 = arith.constant 0 : i32
    return %c0_i32, %c0_i32_0 : i32, i32
  }
  func.func @transform_9(%arg0: i32) -> (i32, i32) {
    %c0_i32 = arith.constant 0 : i32
    %c0_i32_0 = arith.constant 0 : i32
    return %c0_i32, %arg0 : i32, i32
  }
}

</mosaic_0001>

<bundles_post_ra>
// kernel: tpu_custom_call.1
= control target key start
LH: loop header
LB: loop body
LE: loop exit
PB: predicated region body
PF: predicated region fallthrough
CT: control target
= control target key end

     0   :  { %s733_s0 = inlined_call_operand.hbm [shape: f32[8,16], index: 0, kind: input, shape index: {}]   ;;  %s734_s1 = inlined_call_operand.hbm [shape: f32[8,8], index: 1, kind: input, shape index: {}]   ;;  %s735_s2 = inlined_call_operand.hbm [shape: f32[16,32], index: 2, kind: input, shape index: {}]   ;;  %s736_s3 = inlined_call_operand.hbm [shape: f32[8,32], index: 3, kind: input, shape index: {}]   ;;  %s737_s4 = inlined_call_operand.vmem [shape: f32[1,32], index: 4, kind: input, shape index: {}]   ;;  %s738_s5 = inlined_call_operand.hbm [shape: f32[32,32], index: 5, kind: input, shape index: {}]   ;;  %s739_s6 = inlined_call_operand.vmem [shape: f32[1,32], index: 6, kind: input, shape index: {}]   ;;  %s740_s7 = inlined_call_operand.vmem [shape: f32[1,32], index: 7, kind: input, shape index: {}]   ;;  %s741_s8 = inlined_call_operand.<no memory space> [shape: f32[1,1], index: 8, kind: input, shape index: {}]   ;;  %s742_s9 = inlined_call_operand.hbm [shape: f32[1,8], index: 9, kind: output, shape index: {}]  }
   0x1   :  { %v14_v0 = vstv %s741_s8 }
   0x2   :  { %15 = vst [vmem:[#allocation2] sm:$0x1] %v14_v0 }
   0x3   :  { %16 = vsyncpa [#allocation4], 0 }
   0x4   :  { %17 = vsyncpa [#allocation7], 0 }
   0x5   :  { %18 = vsyncpa [#allocation10], 0 }
   0x6   :  { %19 = vsyncpa [#allocation5], 0  ;;  %s638_s11 = smov [#allocation6]   ;;  %s639_s13 = smov [#allocation9]  }
   0x7   :  { %s36_s12 = sshll.u32 %s638_s11, 4  ;;  %s58_s14 = sshll.u32 %s639_s13, 4  ;;  %s37_s12 = int_to_ptr.vmem [resolvable:$true] %s36_s12  ;;  %s59_s14 = int_to_ptr.vmem [resolvable:$true] %s58_s14 }
   0x8   :  { %s518_s15 = scalar_lea.vmem %s37_s12, 128  ;;  %p523_p1 = scmp.lt.s32.totalorder %s37_s12, %s37_s12 }
   0x9   :  { %p519_p0 = scmp.ne.s32.totalorder %s37_s12, %s518_s15  ;;  %p524_p2 = scmp.lt.s32.totalorder %s518_s15, %s518_s15 }
   0xb   :  { %p525_p3 = por %p524_p2, %p523_p1 }
   0xd   :  { %p526_p4 = pnand %p525_p3, %p519_p0 }
   0xf   :  { %529 = shalt.err (!%p526_p4)
}
  0x10   :  { %39 = dma.hbm_to_vmem [thread:$0]  %s734_s1, 128, %s37_s12, [#allocation7]  }
  0x11   :  { %s538_s17 = scalar_lea.vmem %s59_s14, 128  ;;  %p543_p6 = scmp.lt.s32.totalorder %s59_s14, %s59_s14 }
  0x12   :  { %p539_p5 = scmp.ne.s32.totalorder %s59_s14, %s538_s17  ;;  %p544_p7 = scmp.lt.s32.totalorder %s538_s17, %s538_s17 }
  0x14   :  { %p545_p8 = por %p544_p7, %p543_p6 }
  0x16   :  { %p546_p9 = pnand %p545_p8, %p539_p5 }
  0x18   :  { %549 = shalt.err (!%p546_p9)
}
  0x19   :  { %61 = dma.hbm_to_vmem [thread:$0]  %s736_s3, 128, %s59_s14, [#allocation10]  }
  0x1a   :  { %s640_s20 = smov [#allocation3]   ;;  %s641_s22 = smov [#allocation8]  }
  0x1b   :  { %s26_s21 = sshll.u32 %s640_s20, 4  ;;  %s45_s23 = sshll.u32 %s641_s22, 4  ;;  %s27_s21 = int_to_ptr.vmem [resolvable:$true] %s26_s21  ;;  %s46_s23 = int_to_ptr.vmem [resolvable:$true] %s45_s23 }
  0x1c   :  { %s558_s24 = scalar_lea.vmem %s27_s21, 128  ;;  %p563_p11 = scmp.lt.s32.totalorder %s27_s21, %s27_s21 }
  0x1d   :  { %p559_p10 = scmp.ne.s32.totalorder %s27_s21, %s558_s24  ;;  %p564_p12 = scmp.lt.s32.totalorder %s558_s24, %s558_s24 }
  0x1f   :  { %p565_p13 = por %p564_p12, %p563_p11 }
  0x21   :  { %p566_p0 = pnand %p565_p13, %p559_p10 }
  0x23   :  { %569 = shalt.err (!%p566_p0)
}
  0x24   :  { %29 = dma.hbm_to_vmem [thread:$0]  %s733_s0, 128, %s27_s21, [#allocation4]  }
  0x25   :  { %s578_s26 = scalar_lea.vmem %s46_s23, 256  ;;  %p583_p2 = scmp.lt.s32.totalorder %s46_s23, %s46_s23 }
  0x26   :  { %p579_p1 = scmp.ne.s32.totalorder %s46_s23, %s578_s26  ;;  %p584_p3 = scmp.lt.s32.totalorder %s578_s26, %s578_s26 }
  0x28   :  { %p585_p4 = por %p584_p3, %p583_p2 }
  0x2a   :  { %p586_p5 = pnand %p585_p4, %p579_p1 }
  0x2c   :  { %589 = shalt.err (!%p586_p5)
}
  0x2d   :  { %s642_s3 = smov 128   ;;  %s643_s27 = smov 8  }
  0x2e   :  { %51 = dma.hbm_to_vmem [thread:$0]  %s735_s2, 256, %s46_s23, [#allocation7], %s642_s3, %s642_s3, %s643_s27  }
  0x2f   :  { %s644_s30 = smov [#allocation11]  }
  0x30   :  { %s69_s10 = sshll.u32 %s644_s30, 4  ;;  %s70_s10 = int_to_ptr.vmem [resolvable:$true] %s69_s10 }
  0x31   :  { %s598_s11 = scalar_lea.vmem %s70_s10, 512  ;;  %p603_p7 = scmp.lt.s32.totalorder %s70_s10, %s70_s10 }
  0x32   :  { %p599_p6 = scmp.ne.s32.totalorder %s70_s10, %s598_s11  ;;  %p604_p8 = scmp.lt.s32.totalorder %s598_s11, %s598_s11 }
  0x34   :  { %p605_p9 = por %p604_p8, %p603_p7 }
  0x36   :  { %p606_p10 = pnand %p605_p9, %p599_p6 }
  0x38   :  { %609 = shalt.err (!%p606_p10)
}
  0x39   :  { %75 = dma.hbm_to_vmem [thread:$0]  %s738_s5, 512, %s70_s10, [#allocation10], %s642_s3, %s642_s3, %s643_s27  }
  0x3a   :  { %630 = dma.done.wait [#allocation4], 128  }
  0x3b   :  { %631 = vsyncadd [#allocation4], 4294967168 }
  0x3c   :  { %632 = dma.done.wait [#allocation7], 384  }
  0x3d   :  { %633 = vsyncadd [#allocation7], 4294966912 }
  0x3e   :  { %634 = dma.done.wait [#allocation10], 640  }
  0x3f   :  { %635 = vsyncadd [#allocation10], 4294966656  ;;  %v645_v1 = vmov 0.0   ;;  %vm646_vm0 = vmmov 0   ;;  %vm102_vm1 = vcmask 64512   ;;  %v101_v2 = vld [vmem:[#allocation9] sm:$0xff]  ;;  %v352_v27 = vlaneseq }
  0x40   :  { %470 = vmatprep.subr.mxu0 %v645_v1  ;;  %475 = vmatprep.subr.mxu1 %v645_v1  ;;  %v100_v3 = vld [vmem:[#allocation8 + $0x8] sm:$0xff]  ;;  %v98_v4 = vld [vmem:[#allocation6] sm:$0xff]  ;;  %v99_v5 = vld [vmem:[#allocation8] sm:$0xff]  ;;  %vm176_vm2 = vcmask 130048   ;;  %vm270_vm3 = vcmask 261120   ;;  %v647_v20 = vmov 0  }
  0x41   :  { %472 = vmatprep.mubr.msk.f32.mxu0 %vm646_vm0, %v645_v1  ;;  %479 = vmatprep.mubr.msk.f32.mxu1 %vm646_vm0, %v645_v1  ;;  %v97_v6 = vld [vmem:[#allocation3] sm:$0xff]  ;;  %v261_v8 = vld [vmem:[#allocation11 + $0x10] sm:$0xff]  ;;  %v260_v9 = vld [vmem:[#allocation11 + $0x8] sm:$0xff]  ;;  %v353_v28 = vshrl.u32 %v352_v27, 7  ;;  %s648_s16 = smov [#allocation12]   ;;  %vm432_vm4 = vcmask 57344  }
  0x42   :  { %471 = vmatpush3.msra.mxu0 %v101_v2  ;;  %476 = vmatpush3.msra.mxu1 %v100_v3  ;;  %v262_v7 = vld [vmem:[#allocation11 + $0x18] sm:$0xff]  ;;  %v259_v10 = vld [vmem:[#allocation11] sm:$0xff]  ;;  %v453_v14 = vld [vmem:[%s737_s4] ss:$0 sm:$0xff]  ;;  %s440_s8 = sshll.u32 %s648_s16, 4  ;;  %s441_s8 = int_to_ptr.vmem [resolvable:$true] %s440_s8 }
  0x43   :  { %473 = vmatmul.mubr.msk.f32.vlgmr.msra.gmra.mxu0 %vm102_vm1, %v98_v4  ;;  %477 = vmatprep.subr.mxu1 %v645_v1  ;;  %v346_v19 = vld [vmem:[#allocation2] sm:$0x1]  ;;  %v354_v29 = vsub.s32 0, %v353_v28  ;;  %s614_s17 = scalar_lea.vmem %s441_s8, 32  ;;  %p615_p12 = scmp.lt.s32.totalorder %s441_s8, %s441_s8 }
  0x44   :  { %478 = vmatpush3.msra.mxu1 %v99_v5  ;;  %482 = vmatprep.subr.mxu0 %v645_v1  ;;  %v454_v21 = vld [vmem:[%s739_s6] ss:$0 sm:$0xff]  ;;  %s610_s6 = scalar_lea.vmem %s441_s8, 16 }
  0x45   :  { %480 = vmatmul.mubr.msk.f32.vlgmr.msra.gmra.mxu1 %vm176_vm2, %v97_v6  ;;  %490 = vmatprep.mubr.msk.f32.mxu0 %vm646_vm0, %v645_v1  ;;  %v345_v26 = vld [vmem:[%s740_s7] sm:$0x1]  ;;  %p611_p11 = scmp.ne.s32.totalorder %s441_s8, %s610_s6  ;;  %p616_p13 = scmp.lt.s32.totalorder %s614_s17, %s610_s6 }
  0x46   :  { %493 = vmatprep.subr.mxu1 %v645_v1  ;;  %495 = vmatprep.mubr.msk.f32.mxu1 %vm646_vm0, %v645_v1 }
  0x47   :  { %483 = vmatpush3.msra.mxu0 %v262_v7  ;;  %509 = vset.pattern.permute.xlu0 %v647_v20  ;;  %p617_p0 = por %p616_p13, %p615_p12 }
  0x48   :  { %484 = vmatprep.subr.mxu0 %v645_v1  ;;  %349 = vperm.xlu0 %509, %v346_v19  }
  0x49   :  { %485 = vmatpush3.msra.mxu0 %v261_v8  ;;  %p618_p1 = pnand %p617_p0, %p611_p11 }
  0x4a   :  { %486 = vmatprep.subr.mxu0 %v645_v1 }
  0x4b   :  { %487 = vmatpush3.msra.mxu0 %v260_v9 }
  0x4c   :  { %488 = vmatprep.subr.mxu0 %v645_v1 }
  0x4d   :  { %489 = vmatpush3.msra.mxu0 %v259_v10 }
  0xc3   :  { %v350_v30 = vpop.permute.xlu0 %349 }
  0xc4   :  { %v355_v31 = vrot.slane %v350_v30, %v354_v29 }
 0x103   :  { %v172_v11 = vpop.f32.mrf.mxu0 }
 0x105   :  { %v474_v12 = vpop.f32.mrf.mxu0  ;;  %v246_v13 = vpop.f32.mrf.mxu1 }
 0x106   :  { %v247_v15 = vadd.f32 %v246_v13, %v172_v11 }
 0x107   :  { %v481_v16 = vpop.f32.mrf.mxu1 }
 0x108   :  { %v257_v17 = vadd.f32 %v453_v14, %v247_v15 }
 0x10a   :  { %v258_v18 = vmax.f32 %v257_v17, 0.0 }
 0x10c   :  { %491 = vmatmul.mubr.msk.f32.vlgmr.msra.gmra.mxu0 %vm270_vm3, %v258_v18 }
 0x1cc   :  { %v340_v22 = vpop.f32.mrf.mxu0 }
 0x1cd   :  { %v341_v23 = vadd.f32 %v454_v21, %v340_v22 }
 0x1ce   :  { %v492_v24 = vpop.f32.mrf.mxu0 }
 0x1cf   :  { %v344_v25 = vmax.f32 %v341_v23, 0.0 }
 0x1d1   :  { %494 = vmatpush3.xpose.msk.msra.mxu1 %vm270_vm3, %v344_v25 }
 0x1d4   :  { %496 = vmatmul.mubr.msk.f32.vlgmr.msra.gmra.mxu1 %vm270_vm3, %v345_v26 }
 0x294   :  { %v428_v32 = vpop.f32.mrf.mxu1 }
 0x295   :  { %v429_v33 = vadd.f32 %v428_v32, %v355_v31 }
 0x296   :  { %v497_v34 = vpop.f32.mrf.mxu1 }
 0x297   :  { %433 = vst.msk [vmem:[#allocation12] sm:$0x1] %vm432_vm4, %v429_v33 }
 0x298   :  { %621 = shalt.err (!%p618_p1)
}
 0x299   :  { %443 = dma.vmem_to_hbm [thread:$0]  %s441_s8, 16, %s742_s9, [#allocation5]  }
 0x29a   :  { %636 = dma.done.wait [#allocation5], 16  }
 0x29b   :  { %637 = vsyncadd [#allocation5], 4294967280 }
 0x29c   :  { %447 = vsyncpa [#allocation4], 1 }
 0x29d   :  { %448 = vsyncpa [#allocation7], 1 }
 0x29e   :  { %449 = vsyncpa [#allocation10], 1 }
 0x29f   :  { %450 = vsyncpa [#allocation5], 1 }

</bundles_post_ra>
